<compile_context>
chip_gen: v6e
topology: v6e:2x2x1
jax: 0.10.0
libtpu: 0.0.40
codegen_flags: <defaults>
</compile_context>

<pallas_src>
import jax
import jax.numpy as jnp
from jax.experimental import pallas as pl
from jax.experimental.pallas import tpu as pltpu


# ------------------------- VMEM budget / tiling helpers -------------------------

def _round_up(n, q):
    return ((n + q - 1) // q) * q


def _largest_divisor_leq(n, target):
    """Largest divisor of n that is <= target (>= 1)."""
    target = max(1, min(n, target))
    for d in range(target, 0, -1):
        if n % d == 0:
            return d
    return 1


def _compute_vmem_limit():
    """~5/8 of physical VMEM (40 MiB on v7x, 80 MiB on v5e/v6e), leaving headroom for
    compiler-internal scratch.  Fallback assumes the smallest (v7x, 64 MiB) part."""
    cap = 64 * 1024 * 1024
    try:
        cap = int(pltpu.get_tpu_info().vmem_capacity_bytes)
    except Exception:
        pass
    return int(min(max(cap * 5 // 8, 32 * 1024 * 1024), 96 * 1024 * 1024))


_VMEM_LIMIT = _compute_vmem_limit()


def _resident_spec(shape, index_map):
    """Single-buffered BlockSpec for operands whose block index never changes
    (resident weights / biases): avoids the default double-buffer's second copy."""
    try:
        return pl.BlockSpec(shape, index_map, pipeline_mode=pl.Buffered(1))
    except Exception:  # older jax without pipeline_mode: fall back to default
        return pl.BlockSpec(shape, index_map)


def _pick_time_block(T, B_pad, in_dim, nhid_p, max_tsteps=64):
    """Largest divisor of T whose per-block VMEM footprint fits the budget."""
    g4 = 4 * nhid_p
    resident = 2 * (in_dim * g4 + nhid_p * g4) + 4 * g4       # bf16 weights + f32 bias
    state = B_pad * nhid_p * (4 + 4 + 2)                      # h, c (f32) + bf16 shadow
    budget = max(_VMEM_LIMIT - resident - state, _VMEM_LIMIT // 8) // 2
    per_t = B_pad * (g4 * 4 + 2 * in_dim * 2 + 2 * nhid_p * 2)  # gx f32 + 2-buf x/y bf16
    target = max(1, min(max_tsteps, budget // max(per_t, 1)))
    return _largest_divisor_leq(T, target)


# ----------------------------- Pallas kernels -----------------------------

def lstm_layer_kernel(x_ref, wih_t_ref, b_ref, whh_t_ref,
                      y_ref, hT_ref, cT_ref,
                      gx_sc, h_sc, c_sc, hb_sc):
    """One LSTM layer over one time block (grid axis 0 = time blocks, sequential).

    x_ref     : (Tc*B, in_dim)   bf16  time-major rows for this block
    wih_t_ref : (in_dim, 4*nhid) bf16  resident, single-buffered
    b_ref     : (1, 4*nhid)      f32   resident combined bias (b_ih + b_hh)
    whh_t_ref : (nhid, 4*nhid)   bf16  resident, single-buffered
    y_ref     : (Tc*B, nhid)     bf16  layer output for this block
    hT/cT     : (B, nhid)        f32   final state, written on the last grid step
    gx_sc     : (Tc*B, 4*nhid)   f32   fused input-projection gates (VMEM only)
    h_sc/c_sc : (B, nhid)        f32   recurrent state, persists across grid steps
    hb_sc     : (B, nhid)        bf16  bf16 shadow of h (MXU LHS without a per-step cast)
    Gate order follows PyTorch: i, f, g, o.  nhid is padded to a multiple of 128 so
    every gate slice is lane-tile aligned (no XLU relayout on the serial path).
    """
    B, nhid = h_sc.shape
    Tc = x_ref.shape[0] // B
    tb = pl.program_id(0)

    @pl.when(tb == 0)
    def _():
        # Zero initial state (PyTorch hidden=None path); padded lanes stay zero.
        h_sc[...] = jnp.zeros_like(h_sc)
        c_sc[...] = jnp.zeros_like(c_sc)
        hb_sc[...] = jnp.zeros_like(hb_sc)

    # Fused input projection for the whole time block: one large MXU matmul with
    # M = Tc*B rows; the result lives only in VMEM scratch (never touches HBM).
    gx_sc[...] = (
        jnp.dot(x_ref[...], wih_t_ref[...], preferred_element_type=jnp.float32)
        + b_ref[...]
    )

    @pl.loop(0, Tc)
    def _(t):
        row = pl.multiple_of(t * B, B)
        gates = gx_sc[pl.ds(row, B), :] + jnp.dot(
            hb_sc[...], whh_t_ref[...], preferred_element_type=jnp.float32)
        # TODO(synk): bf16 gate nonlinearities on v6e/v7x (kept f32: v5e VPU/EUP
        # have no bf16 path and c-state accumulation must stay f32 anyway).
        i_g = jax.nn.sigmoid(gates[:, 0 * nhid:1 * nhid])
        f_g = jax.nn.sigmoid(gates[:, 1 * nhid:2 * nhid])
        g_g = jnp.tanh(gates[:, 2 * nhid:3 * nhid])
        o_g = jax.nn.sigmoid(gates[:, 3 * nhid:4 * nhid])
        c_new = f_g * c_sc[...] + i_g * g_g
        h_new = o_g * jnp.tanh(c_new)
        c_sc[...] = c_new
        h_sc[...] = h_new
        h_bf = h_new.astype(y_ref.dtype)
        hb_sc[...] = h_bf                       # next step's MXU LHS, no extra cast
        y_ref[pl.ds(row, B), :] = h_bf

    @pl.when(tb == pl.num_programs(0) - 1)
    def _():
        hT_ref[...] = h_sc[...]
        cT_ref[...] = c_sc[...]


def decoder_stats_kernel(x_ref, wt_ref, b_ref, logits_ref, norm_ref, m_sc, l_sc):
    """Stage 1 of the vocab-tiled log_softmax: logits tile + online max / logsumexp.

    Grid = (row blocks "parallel", vocab blocks "arbitrary").
    """
    j = pl.program_id(1)

    @pl.when(j == 0)
    def _():
        m_sc[...] = jnp.full_like(m_sc, -jnp.inf)
        l_sc[...] = jnp.zeros_like(l_sc)

    logits = jnp.dot(x_ref[...], wt_ref[...],
                     preferred_element_type=jnp.float32) + b_ref[...]
    logits_ref[...] = logits

    m_prev = m_sc[...]
    m_new = jnp.maximum(m_prev, jnp.max(logits, axis=-1, keepdims=True))
    l_sc[...] = (l_sc[...] * jnp.exp(m_prev - m_new)
                 + jnp.sum(jnp.exp(logits - m_new), axis=-1, keepdims=True))
    m_sc[...] = m_new

    @pl.when(j == pl.num_programs(1) - 1)
    def _():
        norm_ref[...] = m_sc[...] + jnp.log(l_sc[...])


def decoder_normalize_kernel(logits_ref, norm_ref, out_ref):
    """Stage 2: out = logits - (max + log(sum(exp)))."""
    out_ref[...] = logits_ref[...] - norm_ref[...]


# ----------------------------- wrappers -----------------------------

def lstm_layer(x2d, wih_t, b, whh_t, B_pad):
    """x2d: (T*B_pad, in_dim) bf16 -> (y (T*B_pad, nhid_p) bf16, hT f32, cT f32)."""
    N, in_dim = x2d.shape
    T = N // B_pad
    g4 = whh_t.shape[1]
    nhid_p = g4 // 4

    Tc = _pick_time_block(T, B_pad, in_dim, nhid_p)
    rows = Tc * B_pad
    # TODO(synk): on v7x, add a leading "parallel" batch-block grid axis so the
    # sequential scan can use both TensorCores when B is large.
    return pl.pallas_call(
        lstm_layer_kernel,
        grid=(T // Tc,),
        in_specs=[
            pl.BlockSpec((rows, in_dim), lambda t: (t, 0)),
            _resident_spec((in_dim, g4), lambda t: (0, 0)),    # resident W_ih^T
            _resident_spec((1, g4), lambda t: (0, 0)),         # resident bias
            _resident_spec((nhid_p, g4), lambda t: (0, 0)),    # resident W_hh^T
        ],
        out_specs=(
            pl.BlockSpec((rows, nhid_p), lambda t: (t, 0)),
            pl.BlockSpec((B_pad, nhid_p), lambda t: (0, 0)),   # written on last step
            pl.BlockSpec((B_pad, nhid_p), lambda t: (0, 0)),
        ),
        out_shape=(
            jax.ShapeDtypeStruct((N, nhid_p), jnp.bfloat16),
            jax.ShapeDtypeStruct((B_pad, nhid_p), jnp.float32),
            jax.ShapeDtypeStruct((B_pad, nhid_p), jnp.float32),
        ),
        scratch_shapes=[
            pltpu.VMEM((rows, g4), jnp.float32),               # fused input-proj gates
            pltpu.VMEM((B_pad, nhid_p), jnp.float32),          # h state (f32)
            pltpu.VMEM((B_pad, nhid_p), jnp.float32),          # c state (f32)
            pltpu.VMEM((B_pad, nhid_p), jnp.bfloat16),         # bf16 shadow of h
        ],
        compiler_params=pltpu.CompilerParams(
            dimension_semantics=("arbitrary",),                # sequential in time
            vmem_limit_bytes=_VMEM_LIMIT),
    )(x2d, wih_t, b, whh_t)


def decoder_logsoftmax(x2d, w_t, b):
    """x2d: (N, nhid_p) bf16 -> log_softmax(x2d @ W^T + b): (N, ntoken_p) f32.

    Vocab-tiled two-stage log_softmax: stage 1 streams (nhid_p, vtile) weight slabs and
    keeps a running max / logsumexp per row in VMEM scratch; stage 2 normalizes.
    """
    N, nhid_p = x2d.shape
    ntoken_p = w_t.shape[1]

    rows = min(_round_up(N, 128), 256)                    # MXU-friendly row tile
    N_pad = _round_up(N, rows)
    if N_pad != N:
        x2d = jnp.pad(x2d, ((0, N_pad - N), (0, 0)))      # padded rows sliced off later

    # vocab tile: multiple of 128 that divides ntoken_p, sized from the VMEM budget
    lane_bytes = 2 * (2 * nhid_p) + 2 * (4 * rows) + 8    # w(bf16,2buf)+logits(f32,2buf)+b
    max_vt = max(128, ((_VMEM_LIMIT // 2) // lane_bytes) // 128 * 128)
    vtile = 128 * _largest_divisor_leq(ntoken_p // 128, max(1, max_vt // 128))
    grid = (N_pad // rows, ntoken_p // vtile)

    logits, norm = pl.pallas_call(
        decoder_stats_kernel,
        grid=grid,
        in_specs=[
            pl.BlockSpec((rows, nhid_p), lambda i, j: (i, 0)),
            pl.BlockSpec((nhid_p, vtile), lambda i, j: (0, j)),   # streamed weight slab
            pl.BlockSpec((1, vtile), lambda i, j: (0, j)),
        ],
        out_specs=(
            pl.BlockSpec((rows, vtile), lambda i, j: (i, j)),
            pl.BlockSpec((rows, 1), lambda i, j: (i, 0)),
        ),
        out_shape=(
            jax.ShapeDtypeStruct((N_pad, ntoken_p), jnp.float32),
            jax.ShapeDtypeStruct((N_pad, 1), jnp.float32),
        ),
        scratch_shapes=[pltpu.VMEM((rows, 1), jnp.float32),       # running max
                        pltpu.VMEM((rows, 1), jnp.float32)],      # running sum(exp)
        compiler_params=pltpu.CompilerParams(
            dimension_semantics=("parallel", "arbitrary"),
            vmem_limit_bytes=_VMEM_LIMIT),
    )(x2d, w_t, b)

    out = pl.pallas_call(
        decoder_normalize_kernel,
        grid=grid,
        in_specs=[
            pl.BlockSpec((rows, vtile), lambda i, j: (i, j)),
            pl.BlockSpec((rows, 1), lambda i, j: (i, 0)),
        ],
        out_specs=pl.BlockSpec((rows, vtile), lambda i, j: (i, j)),
        out_shape=jax.ShapeDtypeStruct((N_pad, ntoken_p), jnp.float32),
        compiler_params=pltpu.CompilerParams(
            dimension_semantics=("parallel", "parallel"),
            vmem_limit_bytes=_VMEM_LIMIT),
    )(logits, norm)
    return out[:N]


# ----------------------------- params & model -----------------------------

def init_params(key, ntoken, ninp, nhid, nlayers, init_weight=0.05):
    """PyTorch-layout parameters, all uniform(-init_weight, init_weight)."""
    def u(k, shape):
        return jax.random.uniform(k, shape, jnp.float32,
                                  minval=-init_weight, maxval=init_weight)
    keys = jax.random.split(key, 3 + 4 * nlayers)
    params = {
        "encoder_weight": u(keys[0], (ntoken, ninp)),
        "decoder_weight": u(keys[1], (ntoken, nhid)),
        "decoder_bias": u(keys[2], (ntoken,)),
        "layers": [],
    }
    for l in range(nlayers):
        in_dim = ninp if l == 0 else nhid
        k = keys[3 + 4 * l: 3 + 4 * (l + 1)]
        params["layers"].append({
            "w_ih": u(k[0], (4 * nhid, in_dim)),
            "w_hh": u(k[1], (4 * nhid, nhid)),
            "b_ih": u(k[2], (4 * nhid,)),
            "b_hh": u(k[3], (4 * nhid,)),
        })
    return params


def prepare_params(raw, compute_dtype=jnp.bfloat16):
    """Kernel-ready params: weights pre-transposed, cast to bf16 once and padded
    per-gate so nhid/ntoken are lane-tile aligned; biases pre-combined.
    Padded gate columns are zero (=> padded h/c lanes stay exactly 0 with zero init);
    padded vocab columns get bias -1e30 (=> ~zero probability, sliced off)."""
    ntoken, ninp = raw["encoder_weight"].shape
    nhid = raw["layers"][0]["w_hh"].shape[1]
    nhid_p = _round_up(nhid, 128)
    ntoken_p = _round_up(ntoken, 128)

    def pad_gate_weight(w, in_dim_p):
        in_dim = w.shape[1]
        w4 = w.reshape(4, nhid, in_dim)
        w4 = jnp.pad(w4, ((0, 0), (0, nhid_p - nhid), (0, in_dim_p - in_dim)))
        return jnp.transpose(w4.reshape(4 * nhid_p, in_dim_p)).astype(compute_dtype)

    def pad_gate_bias(bvec):
        b4 = jnp.pad(bvec.reshape(4, nhid), ((0, 0), (0, nhid_p - nhid)))
        return b4.reshape(1, 4 * nhid_p).astype(jnp.float32)

    layers = []
    for li, p in enumerate(raw["layers"]):
        in_dim_p = ninp if li == 0 else nhid_p
        layers.append({
            "wih_t": pad_gate_weight(p["w_ih"], in_dim_p),
            "whh_t": pad_gate_weight(p["w_hh"], nhid_p),
            "b": pad_gate_bias(p["b_ih"] + p["b_hh"]),
        })

    dec_w = jnp.pad(raw["decoder_weight"],
                    ((0, ntoken_p - ntoken), (0, nhid_p - nhid)))
    dec_b = jnp.pad(raw["decoder_bias"], (0, ntoken_p - ntoken),
                    constant_values=-1e30)

    return {
        "ntoken": ntoken, "nhid": nhid, "nhid_p": nhid_p, "ntoken_p": ntoken_p,
        "encoder_weight": raw["encoder_weight"].astype(compute_dtype),  # bf16 gather tbl
        "dec_wt": jnp.transpose(dec_w).astype(compute_dtype),
        "dec_b": dec_b.reshape(1, -1).astype(jnp.float32),
        "layers": layers,
    }


def lstm_model_forward(params, tokens):
    """tokens: (T, B) int32 -> (log_probs (T*B, ntoken) f32, hidden list of (h, c))."""
    T, B = tokens.shape
    nhid, nhid_p = params["nhid"], params["nhid_p"]
    ntoken, ntoken_p = params["ntoken"], params["ntoken_p"]

    B_pad = _round_up(B, 16)                   # bf16 sublane packing (16) alignment
    if B_pad != B:
        tokens = jnp.pad(tokens, ((0, 0), (0, B_pad - B)))   # pad with token 0

    # Embedding gather (plain JAX glue), bf16 to halve HBM traffic.
    # Dropout == identity (eval mode).  TODO(synk): training-mode dropout masks.
    x = jnp.take(params["encoder_weight"], tokens, axis=0)   # (T, B_pad, ninp) bf16
    x2d = x.reshape(T * B_pad, -1)                            # time-major rows

    # TODO(synk): accept a user-supplied non-zero initial hidden state.
    hidden = []
    for layer in params["layers"]:
        x2d, hT, cT = lstm_layer(x2d, layer["wih_t"], layer["b"],
                                 layer["whh_t"], B_pad)
        hidden.append((hT[:B, :nhid][None], cT[:B, :nhid][None]))  # (1,B,nhid) like torch

    log_probs = decoder_logsoftmax(x2d, params["dec_wt"], params["dec_b"])
    log_probs = log_probs.reshape(T, B_pad, ntoken_p)[:, :B, :ntoken]
    return log_probs.reshape(T * B, ntoken), hidden


# ----------------------------- pure-JAX reference -----------------------------

def _reference_forward(raw, tokens, nhid, nlayers):
    T, B = tokens.shape
    x = jnp.take(raw["encoder_weight"], tokens, axis=0)
    for l in range(nlayers):
        p = raw["layers"][l]
        h = jnp.zeros((B, nhid), jnp.float32)
        c = jnp.zeros((B, nhid), jnp.float32)
        ys = []
        for t in range(T):
            gates = x[t] @ p["w_ih"].T + h @ p["w_hh"].T + p["b_ih"] + p["b_hh"]
            i_g = jax.nn.sigmoid(gates[:, 0 * nhid:1 * nhid])
            f_g = jax.nn.sigmoid(gates[:, 1 * nhid:2 * nhid])
            g_g = jnp.tanh(gates[:, 2 * nhid:3 * nhid])
            o_g = jax.nn.sigmoid(gates[:, 3 * nhid:4 * nhid])
            c = f_g * c + i_g * g_g
            h = o_g * jnp.tanh(c)
            ys.append(h)
        x = jnp.stack(ys, axis=0)
    logits = x.reshape(T * B, nhid) @ raw["decoder_weight"].T + raw["decoder_bias"]
    return jax.nn.log_softmax(logits, axis=-1)


# ----------------------------- main -----------------------------

if __name__ == "__main__":
    ntoken, ninp, nhid, nlayers = 64, 32, 32, 2
    T, B = 8, 2   # seq, batch (batch_first=False)

    key = jax.random.PRNGKey(0)
    pkey, ikey = jax.random.split(key)
    raw = init_params(pkey, ntoken, ninp, nhid, nlayers)
    params = prepare_params(raw)

    tokens = jax.random.randint(ikey, (T, B), 0, ntoken, dtype=jnp.int32)

    log_probs, hidden = lstm_model_forward(params, tokens)
    log_probs = jax.block_until_ready(log_probs)
    for h, c in hidden:
        jax.block_until_ready(h)
        jax.block_until_ready(c)

    # sanity check vs the pure-f32 JAX reference (bf16 weights/activations => loose tol)
    ref = _reference_forward(raw, tokens, nhid, nlayers)
    assert log_probs.shape == (T * B, ntoken)
    max_err = float(jnp.max(jnp.abs(log_probs - ref)))
    assert jnp.allclose(log_probs, ref, atol=2e-2, rtol=2e-2), \
        f"mismatch vs reference: {max_err}"

    print("KERNEL_OK")
</pallas_src>

<mosaic_0001>
module attributes {stable_mosaic.version = 11 : i64} {
  func.func @lstm_layer_kernel(%arg0: i32, %arg1: memref<128x32xbf16, #tpu.memory_space<vmem>>, %arg2: memref<32x512xbf16, #tpu.memory_space<vmem>>, %arg3: memref<1x512xf32, #tpu.memory_space<vmem>>, %arg4: memref<128x512xbf16, #tpu.memory_space<vmem>>, %arg5: memref<128x128xbf16, #tpu.memory_space<vmem>>, %arg6: memref<16x128xf32, #tpu.memory_space<vmem>>, %arg7: memref<16x128xf32, #tpu.memory_space<vmem>>, %arg8: memref<128x512xf32, #tpu.memory_space<vmem>>, %arg9: memref<16x128xf32, #tpu.memory_space<vmem>>, %arg10: memref<16x128xf32, #tpu.memory_space<vmem>>, %arg11: memref<16x128xbf16, #tpu.memory_space<vmem>>) attributes {dimension_semantics = [#tpu.dimension_semantics<arbitrary>], iteration_bounds = array<i64: 1>, scalar_prefetch = 0 : i64, scratch_operands = 4 : i64, tpu.core_type = #tpu.core_type<tc>, window_params = [{transform_indices = @transform_0, window_bounds = array<i64: 128, 32>}, {pipeline_mode = #tpu.pipeline_mode<synchronous>, transform_indices = @transform_1, window_bounds = array<i64: 32, 512>}, {pipeline_mode = #tpu.pipeline_mode<synchronous>, transform_indices = @transform_2, window_bounds = array<i64: 1, 512>}, {pipeline_mode = #tpu.pipeline_mode<synchronous>, transform_indices = @transform_3, window_bounds = array<i64: 128, 512>}, {transform_indices = @transform_4, window_bounds = array<i64: 128, 128>}, {pipeline_mode = #tpu.pipeline_mode<synchronous>, transform_indices = @transform_5, window_bounds = array<i64: 16, 128>}, {pipeline_mode = #tpu.pipeline_mode<synchronous>, transform_indices = @transform_6, window_bounds = array<i64: 16, 128>}]} {
    %c0_i32 = arith.constant 0 : i32
    %0 = arith.cmpi eq, %arg0, %c0_i32 : i32
    %1 = arith.extui %0 : i1 to i32
    %c0_i32_0 = arith.constant 0 : i32
    %2 = arith.cmpi ne, %1, %c0_i32_0 : i32
    scf.if %2 {
      %cst_12 = arith.constant 0.000000e+00 : f32
      %14 = vector.broadcast %cst_12 : f32 to vector<16x128xf32>
      %c0_13 = arith.constant 0 : index
      %c0_14 = arith.constant 0 : index
      %15 = vector.load %arg9[%c0_13, %c0_14] : memref<16x128xf32, #tpu.memory_space<vmem>>, vector<16x128xf32>
      tpu.vector_store %arg9[%c0_13, %c0_14], %14 {strides = array<i32>} : memref<16x128xf32, #tpu.memory_space<vmem>>, vector<16x128xf32>,
      %cst_15 = arith.constant 0.000000e+00 : f32
      %16 = vector.broadcast %cst_15 : f32 to vector<16x128xf32>
      %c0_16 = arith.constant 0 : index
      %c0_17 = arith.constant 0 : index
      %17 = vector.load %arg10[%c0_16, %c0_17] : memref<16x128xf32, #tpu.memory_space<vmem>>, vector<16x128xf32>
      tpu.vector_store %arg10[%c0_16, %c0_17], %16 {strides = array<i32>} : memref<16x128xf32, #tpu.memory_space<vmem>>, vector<16x128xf32>,
      %cst_18 = arith.constant 0.000000e+00 : bf16
      %18 = vector.broadcast %cst_18 : bf16 to vector<16x128xbf16>
      %c0_19 = arith.constant 0 : index
      %c0_20 = arith.constant 0 : index
      %19 = vector.load %arg11[%c0_19, %c0_20] : memref<16x128xbf16, #tpu.memory_space<vmem>>, vector<16x128xbf16>
      tpu.vector_store %arg11[%c0_19, %c0_20], %18 {strides = array<i32>} : memref<16x128xbf16, #tpu.memory_space<vmem>>, vector<16x128xbf16>,
    } else {
    }
    %c0 = arith.constant 0 : index
    %c0_1 = arith.constant 0 : index
    %3 = vector.load %arg1[%c0, %c0_1] : memref<128x32xbf16, #tpu.memory_space<vmem>>, vector<128x32xbf16>
    %c0_2 = arith.constant 0 : index
    %c0_3 = arith.constant 0 : index
    %4 = vector.load %arg2[%c0_2, %c0_3] : memref<32x512xbf16, #tpu.memory_space<vmem>>, vector<32x512xbf16>
    %cst = arith.constant dense<0.000000e+00> : vector<128x512xf32>
    %5 = tpu.matmul %3, %4, %cst {dimension_numbers = #tpu.dot_dimension_numbers<[1], [0], [0], [1], [0, 0, 1, 1], [], []>} : vector<128x32xbf16>, vector<32x512xbf16>, vector<128x512xf32> -> vector<128x512xf32>
    %c0_4 = arith.constant 0 : index
    %c0_5 = arith.constant 0 : index
    %6 = vector.load %arg3[%c0_4, %c0_5] : memref<1x512xf32, #tpu.memory_space<vmem>>, vector<1x512xf32>
    %7 = vector.broadcast %6 : vector<1x512xf32> to vector<128x512xf32>
    %8 = arith.addf %5, %7 : vector<128x512xf32>
    %c0_6 = arith.constant 0 : index
    %c0_7 = arith.constant 0 : index
    %9 = vector.load %arg8[%c0_6, %c0_7] : memref<128x512xf32, #tpu.memory_space<vmem>>, vector<128x512xf32>
    tpu.vector_store %arg8[%c0_6, %c0_7], %8 {strides = array<i32>} : memref<128x512xf32, #tpu.memory_space<vmem>>, vector<128x512xf32>,
    %c0_i32_8 = arith.constant 0 : i32
    %c8_i32 = arith.constant 8 : i32
    %10 = arith.addi %c0_i32_8, %c8_i32 : i32
    %c1_i32 = arith.constant 1 : i32
    scf.for %arg12 = %c0_i32_8 to %10 step %c1_i32  : i32 {
      %c1_i32_12 = arith.constant 1 : i32
      %14 = arith.muli %arg12, %c1_i32_12 : i32
      %c0_i32_13 = arith.constant 0 : i32
      %15 = arith.addi %c0_i32_13, %14 : i32
      %c16_i32 = arith.constant 16 : i32
      %16 = arith.muli %15, %c16_i32 : i32
      %17 = tpu.assume_multiple %16, 16 : i32
      %18 = arith.index_cast %17 : i32 to index
      %c0_14 = arith.constant 0 : index
      %19 = vector.load %arg8[%18, %c0_14] : memref<128x512xf32, #tpu.memory_space<vmem>>, vector<16x512xf32>
      %c0_15 = arith.constant 0 : index
      %c0_16 = arith.constant 0 : index
      %20 = vector.load %arg11[%c0_15, %c0_16] : memref<16x128xbf16, #tpu.memory_space<vmem>>, vector<16x128xbf16>
      %c0_17 = arith.constant 0 : index
      %c0_18 = arith.constant 0 : index
      %21 = vector.load %arg4[%c0_17, %c0_18] : memref<128x512xbf16, #tpu.memory_space<vmem>>, vector<128x512xbf16>
      %cst_19 = arith.constant dense<0.000000e+00> : vector<16x512xf32>
      %22 = tpu.matmul %20, %21, %cst_19 {dimension_numbers = #tpu.dot_dimension_numbers<[1], [0], [0], [1], [0, 0, 1, 1], [], []>} : vector<16x128xbf16>, vector<128x512xbf16>, vector<16x512xf32> -> vector<16x512xf32>
      %23 = arith.addf %19, %22 : vector<16x512xf32>
      %24 = vector.extract_strided_slice %23 {offsets = [0, 0], sizes = [16, 128], strides = [1, 1]} : vector<16x512xf32> to vector<16x128xf32>
      %25 = arith.negf %24 : vector<16x128xf32>
      %26 = math.exp %25 : vector<16x128xf32>
      %cst_20 = arith.constant 1.000000e+00 : f32
      %27 = vector.broadcast %cst_20 : f32 to vector<16x128xf32>
      %28 = arith.addf %27, %26 : vector<16x128xf32>
      %29 = arith.divf %27, %28 : vector<16x128xf32>
      %30 = vector.extract_strided_slice %23 {offsets = [0, 128], sizes = [16, 128], strides = [1, 1]} : vector<16x512xf32> to vector<16x128xf32>
      %31 = arith.negf %30 : vector<16x128xf32>
      %32 = math.exp %31 : vector<16x128xf32>
      %cst_21 = arith.constant 1.000000e+00 : f32
      %33 = vector.broadcast %cst_21 : f32 to vector<16x128xf32>
      %34 = arith.addf %33, %32 : vector<16x128xf32>
      %35 = arith.divf %33, %34 : vector<16x128xf32>
      %36 = vector.extract_strided_slice %23 {offsets = [0, 256], sizes = [16, 128], strides = [1, 1]} : vector<16x512xf32> to vector<16x128xf32>
      %37 = math.tanh %36 : vector<16x128xf32>
      %38 = vector.extract_strided_slice %23 {offsets = [0, 384], sizes = [16, 128], strides = [1, 1]} : vector<16x512xf32> to vector<16x128xf32>
      %39 = arith.negf %38 : vector<16x128xf32>
      %40 = math.exp %39 : vector<16x128xf32>
      %cst_22 = arith.constant 1.000000e+00 : f32
      %41 = vector.broadcast %cst_22 : f32 to vector<16x128xf32>
      %42 = arith.addf %41, %40 : vector<16x128xf32>
      %43 = arith.divf %41, %42 : vector<16x128xf32>
      %c0_23 = arith.constant 0 : index
      %c0_24 = arith.constant 0 : index
      %44 = vector.load %arg10[%c0_23, %c0_24] : memref<16x128xf32, #tpu.memory_space<vmem>>, vector<16x128xf32>
      %45 = arith.mulf %35, %44 : vector<16x128xf32>
      %46 = arith.mulf %29, %37 : vector<16x128xf32>
      %47 = arith.addf %45, %46 : vector<16x128xf32>
      %48 = math.tanh %47 : vector<16x128xf32>
      %49 = arith.mulf %43, %48 : vector<16x128xf32>
      %c0_25 = arith.constant 0 : index
      %c0_26 = arith.constant 0 : index
      %50 = vector.load %arg10[%c0_25, %c0_26] : memref<16x128xf32, #tpu.memory_space<vmem>>, vector<16x128xf32>
      tpu.vector_store %arg10[%c0_25, %c0_26], %47 {strides = array<i32>} : memref<16x128xf32, #tpu.memory_space<vmem>>, vector<16x128xf32>,
      %c0_27 = arith.constant 0 : index
      %c0_28 = arith.constant 0 : index
      %51 = vector.load %arg9[%c0_27, %c0_28] : memref<16x128xf32, #tpu.memory_space<vmem>>, vector<16x128xf32>
      tpu.vector_store %arg9[%c0_27, %c0_28], %49 {strides = array<i32>} : memref<16x128xf32, #tpu.memory_space<vmem>>, vector<16x128xf32>,
      %52 = arith.truncf %49 : vector<16x128xf32> to vector<16x128xbf16>
      %c0_29 = arith.constant 0 : index
      %c0_30 = arith.constant 0 : index
      %53 = vector.load %arg11[%c0_29, %c0_30] : memref<16x128xbf16, #tpu.memory_space<vmem>>, vector<16x128xbf16>
      tpu.vector_store %arg11[%c0_29, %c0_30], %52 {strides = array<i32>} : memref<16x128xbf16, #tpu.memory_space<vmem>>, vector<16x128xbf16>,
      %54 = arith.index_cast %17 : i32 to index
      %c0_31 = arith.constant 0 : index
      %55 = vector.load %arg5[%54, %c0_31] : memref<128x128xbf16, #tpu.memory_space<vmem>>, vector<16x128xbf16>
      tpu.vector_store %arg5[%54, %c0_31], %52 {strides = array<i32>} : memref<128x128xbf16, #tpu.memory_space<vmem>>, vector<16x128xbf16>,
    }
    %c8_i32_9 = arith.constant 8 : i32
    %c0_i32_10 = arith.constant 0 : i32
    %11 = arith.cmpi eq, %arg0, %c0_i32_10 : i32
    %12 = arith.extui %11 : i1 to i32
    %c0_i32_11 = arith.constant 0 : i32
    %13 = arith.cmpi ne, %12, %c0_i32_11 : i32
    scf.if %13 {
      %c0_12 = arith.constant 0 : index
      %c0_13 = arith.constant 0 : index
      %14 = vector.load %arg9[%c0_12, %c0_13] : memref<16x128xf32, #tpu.memory_space<vmem>>, vector<16x128xf32>
      %c0_14 = arith.constant 0 : index
      %c0_15 = arith.constant 0 : index
      %15 = vector.load %arg6[%c0_14, %c0_15] : memref<16x128xf32, #tpu.memory_space<vmem>>, vector<16x128xf32>
      tpu.vector_store %arg6[%c0_14, %c0_15], %14 {strides = array<i32>} : memref<16x128xf32, #tpu.memory_space<vmem>>, vector<16x128xf32>,
      %c0_16 = arith.constant 0 : index
      %c0_17 = arith.constant 0 : index
      %16 = vector.load %arg10[%c0_16, %c0_17] : memref<16x128xf32, #tpu.memory_space<vmem>>, vector<16x128xf32>
      %c0_18 = arith.constant 0 : index
      %c0_19 = arith.constant 0 : index
      %17 = vector.load %arg7[%c0_18, %c0_19] : memref<16x128xf32, #tpu.memory_space<vmem>>, vector<16x128xf32>
      tpu.vector_store %arg7[%c0_18, %c0_19], %16 {strides = array<i32>} : memref<16x128xf32, #tpu.memory_space<vmem>>, vector<16x128xf32>,
    } else {
    }
    return
  }
  func.func @transform_0(%arg0: i32) -> (i32, i32) {
    %c0_i32 = arith.constant 0 : i32
    %c0_i32_0 = arith.constant 0 : i32
    return %arg0, %c0_i32 : i32, i32
  }
  func.func @transform_1(%arg0: i32) -> (i32, i32) {
    %c0_i32 = arith.constant 0 : i32
    %c0_i32_0 = arith.constant 0 : i32
    %c0_i32_1 = arith.constant 0 : i32
    return %c0_i32, %c0_i32_0 : i32, i32
  }
  func.func @transform_2(%arg0: i32) -> (i32, i32) {
    %c0_i32 = arith.constant 0 : i32
    %c0_i32_0 = arith.constant 0 : i32
    %c0_i32_1 = arith.constant 0 : i32
    return %c0_i32, %c0_i32_0 : i32, i32
  }
  func.func @transform_3(%arg0: i32) -> (i32, i32) {
    %c0_i32 = arith.constant 0 : i32
    %c0_i32_0 = arith.constant 0 : i32
    %c0_i32_1 = arith.constant 0 : i32
    return %c0_i32, %c0_i32_0 : i32, i32
  }
  func.func @transform_4(%arg0: i32) -> (i32, i32) {
    %c0_i32 = arith.constant 0 : i32
    %c0_i32_0 = arith.constant 0 : i32
    return %arg0, %c0_i32 : i32, i32
  }
  func.func @transform_5(%arg0: i32) -> (i32, i32) {
    %c0_i32 = arith.constant 0 : i32
    %c0_i32_0 = arith.constant 0 : i32
    %c0_i32_1 = arith.constant 0 : i32
    return %c0_i32, %c0_i32_0 : i32, i32
  }
  func.func @transform_6(%arg0: i32) -> (i32, i32) {
    %c0_i32 = arith.constant 0 : i32
    %c0_i32_0 = arith.constant 0 : i32
    %c0_i32_1 = arith.constant 0 : i32
    return %c0_i32, %c0_i32_0 : i32, i32
  }
}

</mosaic_0001>

<bundles_post_ra>
// kernel: tpu_custom_call.1
= control target key start
LH: loop header
LB: loop body
LE: loop exit
PB: predicated region body
PF: predicated region fallthrough
CT: control target
= control target key end

     0   :  { %12 = vsyncpa [#allocation7], 0  ;;  %s1466_s0 = inlined_call_operand.vmem [shape: bf16[128,32], index: 0, kind: input, shape index: {}]   ;;  %s1467_s1 = inlined_call_operand.vmem [shape: bf16[32,512], index: 1, kind: input, shape index: {}]   ;;  %s1468_s2 = inlined_call_operand.vmem [shape: f32[1,512], index: 2, kind: input, shape index: {}]   ;;  %s1469_s3 = inlined_call_operand.hbm [shape: bf16[128,512], index: 3, kind: input, shape index: {}]   ;;  %s1470_s4 = inlined_call_operand.hbm [shape: bf16[128,128], index: 4, kind: output, shape index: {0}]   ;;  %s1471_s5 = inlined_call_operand.hbm [shape: f32[16,128], index: 5, kind: output, shape index: {1}]   ;;  %s1472_s6 = inlined_call_operand.hbm [shape: f32[16,128], index: 6, kind: output, shape index: {2}]  }
   0x1   :  { %13 = vsyncpa [#allocation8], 0 }
   0x2   :  { %14 = vsyncpa [#allocation11], 0  ;;  %s1244_s21 = smov [#allocation6]  }
   0x3   :  { %s26_s22 = sshll.u32 %s1244_s21, 4  ;;  %s27_s22 = int_to_ptr.vmem [resolvable:$true] %s26_s22 }
   0x4   :  { %s1158_s23 = scalar_lea.vmem %s27_s22, 4096  ;;  %p1163_p1 = scmp.lt.s32.totalorder %s27_s22, %s27_s22 }
   0x5   :  { %p1159_p0 = scmp.ne.s32.totalorder %s27_s22, %s1158_s23  ;;  %p1164_p2 = scmp.lt.s32.totalorder %s1158_s23, %s1158_s23 }
   0x7   :  { %p1165_p3 = por %p1164_p2, %p1163_p1 }
   0x9   :  { %p1166_p4 = pnand %p1165_p3, %p1159_p0 }
   0xb   :  { %1169 = shalt.err (!%p1166_p4)
}
   0xc   :  { %s1245_s24 = smov 256   ;;  %s1246_s25 = smov 16  }
   0xd   :  { %32 = dma.hbm_to_vmem [thread:$0]  %s1469_s3, 4096, %s27_s22, [#allocation7], %s1245_s24, %s1245_s24, %s1246_s25  }
   0xe   :  { %1234 = dma.done.wait [#allocation7], 4096  }
   0xf   :  { %1235 = vsyncadd [#allocation7], 4294963200  ;;  %v1247_v0 = vmov 0.0   ;;  %v1248_v1 = vmov 0   ;;  %v1049_v2 = vld [vmem:[%s1467_s1 + $0x24] ss:$16 sps:$4 sm:$0xff]   ;;  %v73_v18 = vlaneseq }
  0x10   :  { %41 = vst [vmem:[#allocation3] sm:$0xff] %v1247_v0  ;;  %42 = vst [vmem:[#allocation3 + $0x8] sm:$0xff] %v1247_v0  ;;  %230 = vmatprep.mubr.bf16.mxu0 %v1248_v1  ;;  %343 = vmatprep.mubr.bf16.mxu1 %v1248_v1  ;;  %v1051_v3 = vld [vmem:[%s1467_s1 + $0x2c] ss:$16 sps:$4 sm:$0xff]   ;;  %v1053_v4 = vld [vmem:[%s1467_s1 + $0x20] ss:$16 sps:$4 sm:$0xff]  }
  0x11   :  { %43 = vst [vmem:[#allocation4 + $0x8] sm:$0xff] %v1247_v0  ;;  %44 = vst [vmem:[#allocation4] sm:$0xff] %v1247_v0  ;;  %210 = vmatprep.subr.bf16.mxu0 %v1049_v2  ;;  %v1054_v5 = vld [vmem:[%s1467_s1 + $0x28] ss:$16 sps:$4 sm:$0xff]   ;;  %323 = vmatprep.subr.bf16.mxu1 %v1051_v3  ;;  %v1055_v6 = vld [vmem:[%s1467_s1 + $0x4] ss:$16 sps:$4 sm:$0xff]  }
  0x12   :  { %45 = vst [vmem:[#allocation5] sm:$0xf] %v1248_v1  ;;  %46 = vst [vmem:[#allocation5 + $0x4] sm:$0xf] %v1248_v1  ;;  %211 = vmatpush1.bf16.msra.mxu0 %v1053_v4  ;;  %324 = vmatpush1.bf16.msra.mxu1 %v1054_v5  ;;  %v1057_v7 = vld [vmem:[%s1467_s1 + $0xc] ss:$16 sps:$4 sm:$0xff]  }
  0x13   :  { %v1059_v8 = vld [vmem:[%s1467_s1] ss:$16 sps:$4 sm:$0xff]   ;;  %212 = vmatprep.subr.bf16.mxu0 %v1055_v6  ;;  %v1060_v9 = vld [vmem:[%s1467_s1 + $0x8] ss:$16 sps:$4 sm:$0xff]   ;;  %325 = vmatprep.subr.bf16.mxu1 %v1057_v7  ;;  %vm173_vm0 = vcmask 261120   ;;  %v74_v19 = vshrl.u32 %v73_v18, 7 }
  0x14   :  { %v1061_v10 = vld [vmem:[%s1466_s0] sm:$0xff]   ;;  %v1062_v11 = vld [vmem:[%s1466_s0 + $0x8] sm:$0xff]   ;;  %v1063_v12 = vld [vmem:[%s1466_s0 + $0x10] sm:$0xff]  }
  0x15   :  { %v1064_v13 = vld [vmem:[%s1466_s0 + $0x18] sm:$0xff]   ;;  %v1065_v14 = vld [vmem:[%s1466_s0 + $0x20] sm:$0xff]   ;;  %v1066_v15 = vld [vmem:[%s1466_s0 + $0x28] sm:$0xff]   ;;  %v75_v20 = vsub.s32 0, %v74_v19  ;;  %v83_v21 = vsub.s32 2, %v74_v19  ;;  %v79_v23 = vsub.s32 1, %v74_v19 }
  0x16   :  { %213 = vmatpush1.bf16.msra.mxu0 %v1059_v8  ;;  %326 = vmatpush1.bf16.msra.mxu1 %v1060_v9  ;;  %v1067_v16 = vld [vmem:[%s1466_s0 + $0x30] sm:$0xff]   ;;  %v1068_v17 = vld [vmem:[%s1466_s0 + $0x38] sm:$0xff]   ;;  %v71_v22 = vld [vmem:[%s1468_s2] sm:$0xf]  ;;  %v87_v24 = vsub.s32 3, %v74_v19  ;;  %s1434_s0 = smov 0  }
  0x17   :  { %v1362_v25 = vrot.slane %v71_v22, %v75_v20  ;;  %v1364_v26 = vrot.slane %v71_v22, %v83_v21  ;;  %v1366_v27 = vrot.slane %v71_v22, %v79_v23 }
  0x18   :  { %v1368_v28 = vrot.slane %v71_v22, %v87_v24 }
  0x19   :  { %954 = vmatmul.mubr.msk.bf16.vlgmr.msra.gmra.mxu0 %vm173_vm0, %v1061_v10  ;;  %962 = vmatmul.mubr.msk.bf16.vlgmr.msra.gmra.mxu1 %vm173_vm0, %v1061_v10 }
  0x1a   :  { %240 = vmatprep.mubr.bf16.mxu0 %v1248_v1  ;;  %353 = vmatprep.mubr.bf16.mxu1 %v1248_v1 }
  0x21   :  { %955 = vmatmul.mubr.msk.bf16.gmra.mxu0 %vm173_vm0, %v1062_v11  ;;  %963 = vmatmul.mubr.msk.bf16.gmra.mxu1 %vm173_vm0, %v1062_v11 }
  0x22   :  { %250 = vmatprep.mubr.bf16.mxu0 %v1248_v1  ;;  %363 = vmatprep.mubr.bf16.mxu1 %v1248_v1 }
  0x29   :  { %956 = vmatmul.mubr.msk.bf16.gmra.mxu0 %vm173_vm0, %v1063_v12  ;;  %964 = vmatmul.mubr.msk.bf16.gmra.mxu1 %vm173_vm0, %v1063_v12 }
  0x2a   :  { %260 = vmatprep.mubr.bf16.mxu0 %v1248_v1  ;;  %373 = vmatprep.mubr.bf16.mxu1 %v1248_v1 }
  0x31   :  { %957 = vmatmul.mubr.msk.bf16.gmra.mxu0 %vm173_vm0, %v1064_v13  ;;  %965 = vmatmul.mubr.msk.bf16.gmra.mxu1 %vm173_vm0, %v1064_v13 }
  0x32   :  { %270 = vmatprep.mubr.bf16.mxu0 %v1248_v1  ;;  %383 = vmatprep.mubr.bf16.mxu1 %v1248_v1 }
  0x39   :  { %958 = vmatmul.mubr.msk.bf16.gmra.mxu0 %vm173_vm0, %v1065_v14  ;;  %966 = vmatmul.mubr.msk.bf16.gmra.mxu1 %vm173_vm0, %v1065_v14 }
  0x3a   :  { %280 = vmatprep.mubr.bf16.mxu0 %v1248_v1  ;;  %393 = vmatprep.mubr.bf16.mxu1 %v1248_v1 }
  0x41   :  { %959 = vmatmul.mubr.msk.bf16.gmra.mxu0 %vm173_vm0, %v1066_v15  ;;  %967 = vmatmul.mubr.msk.bf16.gmra.mxu1 %vm173_vm0, %v1066_v15 }
  0x42   :  { %290 = vmatprep.mubr.bf16.mxu0 %v1248_v1  ;;  %403 = vmatprep.mubr.bf16.mxu1 %v1248_v1 }
  0x49   :  { %960 = vmatmul.mubr.msk.bf16.gmra.mxu0 %vm173_vm0, %v1067_v16  ;;  %968 = vmatmul.mubr.msk.bf16.gmra.mxu1 %vm173_vm0, %v1067_v16 }
  0x4a   :  { %300 = vmatprep.mubr.bf16.mxu0 %v1248_v1  ;;  %413 = vmatprep.mubr.bf16.mxu1 %v1248_v1 }
  0x51   :  { %961 = vmatmul.mubr.msk.bf16.gmra.mxu0 %vm173_vm0, %v1068_v17  ;;  %969 = vmatmul.mubr.msk.bf16.gmra.mxu1 %vm173_vm0, %v1068_v17 }
  0xd9   :  { %v232_v29 = vpop.f32.mrf.mxu0  ;;  %v345_v30 = vpop.f32.mrf.mxu1 }
  0xda   :  { %v233_v31 = vadd.f32 %v232_v29, %v1362_v25  ;;  %v346_v32 = vadd.f32 %v345_v30, %v1364_v26 }
  0xdb   :  { %v234_v33 = vpop.f32.mrf.mxu0  ;;  %v347_v34 = vpop.f32.mrf.mxu1 }
  0xdc   :  { %424 = vst [vmem:[#allocation2] sm:$0xff] %v233_v31  ;;  %426 = vst [vmem:[#allocation2 + $0x10] sm:$0xff] %v346_v32  ;;  %v235_v35 = vadd.f32 %v234_v33, %v1366_v27  ;;  %v348_v36 = vadd.f32 %v347_v34, %v1368_v28 }
  0xdd   :  { %v236_v37 = vpop.f32.mrf.mxu0  ;;  %v349_v38 = vpop.f32.mrf.mxu1 }
  0xde   :  { %425 = vst [vmem:[#allocation2 + $0x8] sm:$0xff] %v235_v35  ;;  %427 = vst [vmem:[#allocation2 + $0x18] sm:$0xff] %v348_v36  ;;  %v237_v39 = vadd.f32 %v236_v37, %v1362_v25  ;;  %v350_v40 = vadd.f32 %v349_v38, %v1364_v26 }
  0xdf   :  { %v238_v41 = vpop.f32.mrf.mxu0  ;;  %v351_v42 = vpop.f32.mrf.mxu1 }
  0xe0   :  { %428 = vst [vmem:[#allocation2 + $0x20] sm:$0xff] %v237_v39  ;;  %430 = vst [vmem:[#allocation2 + $0x30] sm:$0xff] %v350_v40  ;;  %v239_v43 = vadd.f32 %v238_v41, %v1366_v27  ;;  %v352_v44 = vadd.f32 %v351_v42, %v1368_v28 }
  0xe1   :  { %v242_v45 = vpop.f32.mrf.mxu0  ;;  %v355_v46 = vpop.f32.mrf.mxu1 }
  0xe2   :  { %429 = vst [vmem:[#allocation2 + $0x28] sm:$0xff] %v239_v43  ;;  %431 = vst [vmem:[#allocation2 + $0x38] sm:$0xff] %v352_v44  ;;  %v243_v47 = vadd.f32 %v242_v45, %v1362_v25  ;;  %v356_v48 = vadd.f32 %v355_v46, %v1364_v26 }
  0xe3   :  { %v244_v49 = vpop.f32.mrf.mxu0  ;;  %v357_v50 = vpop.f32.mrf.mxu1 }
  0xe4   :  { %432 = vst [vmem:[#allocation2 + $0x40] sm:$0xff] %v243_v47  ;;  %434 = vst [vmem:[#allocation2 + $0x50] sm:$0xff] %v356_v48  ;;  %v245_v51 = vadd.f32 %v244_v49, %v1366_v27  ;;  %v358_v52 = vadd.f32 %v357_v50, %v1368_v28 }
  0xe5   :  { %v246_v53 = vpop.f32.mrf.mxu0  ;;  %v359_v54 = vpop.f32.mrf.mxu1 }
  0xe6   :  { %433 = vst [vmem:[#allocation2 + $0x48] sm:$0xff] %v245_v51  ;;  %435 = vst [vmem:[#allocation2 + $0x58] sm:$0xff] %v358_v52  ;;  %v247_v55 = vadd.f32 %v246_v53, %v1362_v25  ;;  %v360_v56 = vadd.f32 %v359_v54, %v1364_v26 }
  0xe7   :  { %v248_v57 = vpop.f32.mrf.mxu0  ;;  %v361_v58 = vpop.f32.mrf.mxu1 }
  0xe8   :  { %436 = vst [vmem:[#allocation2 + $0x60] sm:$0xff] %v247_v55  ;;  %438 = vst [vmem:[#allocation2 + $0x70] sm:$0xff] %v360_v56  ;;  %v249_v59 = vadd.f32 %v248_v57, %v1366_v27  ;;  %v362_v60 = vadd.f32 %v361_v58, %v1368_v28 }
  0xe9   :  { %v252_v61 = vpop.f32.mrf.mxu0  ;;  %v365_v62 = vpop.f32.mrf.mxu1 }
  0xea   :  { %437 = vst [vmem:[#allocation2 + $0x68] sm:$0xff] %v249_v59  ;;  %439 = vst [vmem:[#allocation2 + $0x78] sm:$0xff] %v362_v60  ;;  %v253_v63 = vadd.f32 %v252_v61, %v1362_v25  ;;  %v366_v0 = vadd.f32 %v365_v62, %v1364_v26 }
  0xeb   :  { %v254_v1 = vpop.f32.mrf.mxu0  ;;  %v367_v2 = vpop.f32.mrf.mxu1 }
  0xec   :  { %440 = vst [vmem:[#allocation2 + $0x80] sm:$0xff] %v253_v63  ;;  %442 = vst [vmem:[#allocation2 + $0x90] sm:$0xff] %v366_v0  ;;  %v255_v3 = vadd.f32 %v254_v1, %v1366_v27  ;;  %v368_v4 = vadd.f32 %v367_v2, %v1368_v28 }
  0xed   :  { %v256_v5 = vpop.f32.mrf.mxu0  ;;  %v369_v6 = vpop.f32.mrf.mxu1 }
  0xee   :  { %441 = vst [vmem:[#allocation2 + $0x88] sm:$0xff] %v255_v3  ;;  %443 = vst [vmem:[#allocation2 + $0x98] sm:$0xff] %v368_v4  ;;  %v257_v7 = vadd.f32 %v256_v5, %v1362_v25  ;;  %v370_v8 = vadd.f32 %v369_v6, %v1364_v26 }
  0xef   :  { %v258_v9 = vpop.f32.mrf.mxu0  ;;  %v371_v10 = vpop.f32.mrf.mxu1 }
  0xf0   :  { %444 = vst [vmem:[#allocation2 + $0xa0] sm:$0xff] %v257_v7  ;;  %446 = vst [vmem:[#allocation2 + $0xb0] sm:$0xff] %v370_v8  ;;  %v259_v11 = vadd.f32 %v258_v9, %v1366_v27  ;;  %v372_v12 = vadd.f32 %v371_v10, %v1368_v28 }
  0xf1   :  { %v262_v13 = vpop.f32.mrf.mxu0  ;;  %v375_v14 = vpop.f32.mrf.mxu1 }
  0xf2   :  { %445 = vst [vmem:[#allocation2 + $0xa8] sm:$0xff] %v259_v11  ;;  %447 = vst [vmem:[#allocation2 + $0xb8] sm:$0xff] %v372_v12  ;;  %v263_v15 = vadd.f32 %v262_v13, %v1362_v25  ;;  %v376_v16 = vadd.f32 %v375_v14, %v1364_v26 }
  0xf3   :  { %v264_v17 = vpop.f32.mrf.mxu0  ;;  %v377_v18 = vpop.f32.mrf.mxu1 }
  0xf4   :  { %448 = vst [vmem:[#allocation2 + $0xc0] sm:$0xff] %v263_v15  ;;  %450 = vst [vmem:[#allocation2 + $0xd0] sm:$0xff] %v376_v16  ;;  %v265_v19 = vadd.f32 %v264_v17, %v1366_v27  ;;  %v378_v20 = vadd.f32 %v377_v18, %v1368_v28 }
  0xf5   :  { %v266_v21 = vpop.f32.mrf.mxu0  ;;  %v379_v22 = vpop.f32.mrf.mxu1 }
  0xf6   :  { %449 = vst [vmem:[#allocation2 + $0xc8] sm:$0xff] %v265_v19  ;;  %451 = vst [vmem:[#allocation2 + $0xd8] sm:$0xff] %v378_v20  ;;  %v267_v23 = vadd.f32 %v266_v21, %v1362_v25  ;;  %v380_v24 = vadd.f32 %v379_v22, %v1364_v26 }
  0xf7   :  { %v268_v29 = vpop.f32.mrf.mxu0  ;;  %v381_v30 = vpop.f32.mrf.mxu1 }
  0xf8   :  { %452 = vst [vmem:[#allocation2 + $0xe0] sm:$0xff] %v267_v23  ;;  %454 = vst [vmem:[#allocation2 + $0xf0] sm:$0xff] %v380_v24  ;;  %v269_v31 = vadd.f32 %v268_v29, %v1366_v27  ;;  %v382_v32 = vadd.f32 %v381_v30, %v1368_v28 }
  0xf9   :  { %v272_v33 = vpop.f32.mrf.mxu0  ;;  %v385_v34 = vpop.f32.mrf.mxu1 }
  0xfa   :  { %453 = vst [vmem:[#allocation2 + $0xe8] sm:$0xff] %v269_v31  ;;  %455 = vst [vmem:[#allocation2 + $0xf8] sm:$0xff] %v382_v32  ;;  %v273_v35 = vadd.f32 %v272_v33, %v1362_v25  ;;  %v386_v36 = vadd.f32 %v385_v34, %v1364_v26 }
  0xfb   :  { %v274_v37 = vpop.f32.mrf.mxu0  ;;  %v387_v38 = vpop.f32.mrf.mxu1 }
  0xfc   :  { %456 = vst [vmem:[#allocation2 + $0x100] sm:$0xff] %v273_v35  ;;  %458 = vst [vmem:[#allocation2 + $0x110] sm:$0xff] %v386_v36  ;;  %v275_v39 = vadd.f32 %v274_v37, %v1366_v27  ;;  %v388_v40 = vadd.f32 %v387_v38, %v1368_v28 }
  0xfd   :  { %v276_v41 = vpop.f32.mrf.mxu0  ;;  %v389_v42 = vpop.f32.mrf.mxu1 }
  0xfe   :  { %457 = vst [vmem:[#allocation2 + $0x108] sm:$0xff] %v275_v39  ;;  %459 = vst [vmem:[#allocation2 + $0x118] sm:$0xff] %v388_v40  ;;  %v277_v43 = vadd.f32 %v276_v41, %v1362_v25  ;;  %v390_v44 = vadd.f32 %v389_v42, %v1364_v26 }
  0xff   :  { %v278_v45 = vpop.f32.mrf.mxu0  ;;  %v391_v46 = vpop.f32.mrf.mxu1 }
 0x100   :  { %460 = vst [vmem:[#allocation2 + $0x120] sm:$0xff] %v277_v43  ;;  %462 = vst [vmem:[#allocation2 + $0x130] sm:$0xff] %v390_v44  ;;  %v279_v47 = vadd.f32 %v278_v45, %v1366_v27  ;;  %v392_v48 = vadd.f32 %v391_v46, %v1368_v28 }
 0x101   :  { %v282_v49 = vpop.f32.mrf.mxu0  ;;  %v395_v50 = vpop.f32.mrf.mxu1 }
 0x102   :  { %461 = vst [vmem:[#allocation2 + $0x128] sm:$0xff] %v279_v47  ;;  %463 = vst [vmem:[#allocation2 + $0x138] sm:$0xff] %v392_v48  ;;  %v283_v51 = vadd.f32 %v282_v49, %v1362_v25  ;;  %v396_v52 = vadd.f32 %v395_v50, %v1364_v26 }
 0x103   :  { %v284_v53 = vpop.f32.mrf.mxu0  ;;  %v397_v54 = vpop.f32.mrf.mxu1 }
 0x104   :  { %464 = vst [vmem:[#allocation2 + $0x140] sm:$0xff] %v283_v51  ;;  %466 = vst [vmem:[#allocation2 + $0x150] sm:$0xff] %v396_v52  ;;  %v285_v55 = vadd.f32 %v284_v53, %v1366_v27  ;;  %v398_v56 = vadd.f32 %v397_v54, %v1368_v28 }
 0x105   :  { %v286_v57 = vpop.f32.mrf.mxu0  ;;  %v399_v58 = vpop.f32.mrf.mxu1 }
 0x106   :  { %465 = vst [vmem:[#allocation2 + $0x148] sm:$0xff] %v285_v55  ;;  %467 = vst [vmem:[#allocation2 + $0x158] sm:$0xff] %v398_v56  ;;  %v287_v59 = vadd.f32 %v286_v57, %v1362_v25  ;;  %v400_v60 = vadd.f32 %v399_v58, %v1364_v26 }
 0x107   :  { %v288_v61 = vpop.f32.mrf.mxu0  ;;  %v401_v62 = vpop.f32.mrf.mxu1 }
 0x108   :  { %468 = vst [vmem:[#allocation2 + $0x160] sm:$0xff] %v287_v59  ;;  %470 = vst [vmem:[#allocation2 + $0x170] sm:$0xff] %v400_v60  ;;  %v289_v63 = vadd.f32 %v288_v61, %v1366_v27  ;;  %v402_v0 = vadd.f32 %v401_v62, %v1368_v28 }
 0x109   :  { %v292_v1 = vpop.f32.mrf.mxu0  ;;  %v405_v2 = vpop.f32.mrf.mxu1 }
 0x10a   :  { %469 = vst [vmem:[#allocation2 + $0x168] sm:$0xff] %v289_v63  ;;  %471 = vst [vmem:[#allocation2 + $0x178] sm:$0xff] %v402_v0  ;;  %v293_v3 = vadd.f32 %v292_v1, %v1362_v25  ;;  %v406_v4 = vadd.f32 %v405_v2, %v1364_v26 }
 0x10b   :  { %v294_v5 = vpop.f32.mrf.mxu0  ;;  %v407_v6 = vpop.f32.mrf.mxu1 }
 0x10c   :  { %472 = vst [vmem:[#allocation2 + $0x180] sm:$0xff] %v293_v3  ;;  %474 = vst [vmem:[#allocation2 + $0x190] sm:$0xff] %v406_v4  ;;  %v295_v7 = vadd.f32 %v294_v5, %v1366_v27  ;;  %v408_v8 = vadd.f32 %v407_v6, %v1368_v28 }
 0x10d   :  { %v296_v9 = vpop.f32.mrf.mxu0  ;;  %v409_v10 = vpop.f32.mrf.mxu1 }
 0x10e   :  { %473 = vst [vmem:[#allocation2 + $0x188] sm:$0xff] %v295_v7  ;;  %475 = vst [vmem:[#allocation2 + $0x198] sm:$0xff] %v408_v8  ;;  %v297_v11 = vadd.f32 %v296_v9, %v1362_v25  ;;  %v410_v12 = vadd.f32 %v409_v10, %v1364_v26 }
 0x10f   :  { %v298_v13 = vpop.f32.mrf.mxu0  ;;  %v411_v14 = vpop.f32.mrf.mxu1 }
 0x110   :  { %476 = vst [vmem:[#allocation2 + $0x1a0] sm:$0xff] %v297_v11  ;;  %478 = vst [vmem:[#allocation2 + $0x1b0] sm:$0xff] %v410_v12  ;;  %v299_v15 = vadd.f32 %v298_v13, %v1366_v27  ;;  %v412_v16 = vadd.f32 %v411_v14, %v1368_v28 }
 0x111   :  { %v302_v17 = vpop.f32.mrf.mxu0  ;;  %v415_v18 = vpop.f32.mrf.mxu1 }
 0x112   :  { %477 = vst [vmem:[#allocation2 + $0x1a8] sm:$0xff] %v299_v15  ;;  %479 = vst [vmem:[#allocation2 + $0x1b8] sm:$0xff] %v412_v16  ;;  %v303_v19 = vadd.f32 %v302_v17, %v1362_v25  ;;  %v416_v20 = vadd.f32 %v415_v18, %v1364_v26 }
 0x113   :  { %v304_v21 = vpop.f32.mrf.mxu0  ;;  %v417_v22 = vpop.f32.mrf.mxu1 }
 0x114   :  { %480 = vst [vmem:[#allocation2 + $0x1c0] sm:$0xff] %v303_v19  ;;  %482 = vst [vmem:[#allocation2 + $0x1d0] sm:$0xff] %v416_v20  ;;  %v305_v23 = vadd.f32 %v304_v21, %v1366_v27  ;;  %v418_v24 = vadd.f32 %v417_v22, %v1368_v28 }
 0x115   :  { %v306_v29 = vpop.f32.mrf.mxu0  ;;  %v419_v30 = vpop.f32.mrf.mxu1 }
 0x116   :  { %481 = vst [vmem:[#allocation2 + $0x1c8] sm:$0xff] %v305_v23  ;;  %483 = vst [vmem:[#allocation2 + $0x1d8] sm:$0xff] %v418_v24  ;;  %v307_v31 = vadd.f32 %v306_v29, %v1362_v25  ;;  %v420_v32 = vadd.f32 %v419_v30, %v1364_v26 }
 0x117   :  { %v308_v33 = vpop.f32.mrf.mxu0  ;;  %v421_v34 = vpop.f32.mrf.mxu1 }
 0x118   :  { %484 = vst [vmem:[#allocation2 + $0x1e0] sm:$0xff] %v307_v31  ;;  %486 = vst [vmem:[#allocation2 + $0x1f0] sm:$0xff] %v420_v32  ;;  %v309_v35 = vadd.f32 %v308_v33, %v1366_v27  ;;  %v422_v36 = vadd.f32 %v421_v34, %v1368_v28 }
 0x11a   :  { %485 = vst [vmem:[#allocation2 + $0x1e8] sm:$0xff] %v309_v35  ;;  %487 = vst [vmem:[#allocation2 + $0x1f8] sm:$0xff] %v422_v36 }
 0x11b LB: > { %v1069_v25 = vld [vmem:[#allocation6 + $0xe4] ss:$16 sps:$4 sm:$0xff]   ;;  %v1071_v37 = vld [vmem:[#allocation6 + $0xe0] ss:$16 sps:$4 sm:$0xff]   ;;  %v1249_v26 = vmov 0   ;;  %v1108_v1 = vld [vmem:[#allocation5] sm:$0xff]   ;;  %s1242_s0 = sphi %s1434_s0, %s493_s0  }
 0x11c   : > { %740 = vmatprep.mubr.bf16.mxu0 %v1249_v26  ;;  %783 = vmatprep.mubr.bf16.mxu1 %v1249_v26  ;;  %v1072_v38 = vld [vmem:[#allocation6 + $0xc4] ss:$16 sps:$4 sm:$0xff]   ;;  %v1074_v27 = vld [vmem:[#allocation6 + $0xc0] ss:$16 sps:$4 sm:$0xff]   ;;  %v1080_v39 = vld [vmem:[#allocation6 + $0xec] ss:$16 sps:$4 sm:$0xff]  }
 0x11d   : > { %708 = vmatprep.subr.bf16.mxu0 %v1069_v25  ;;  %v1075_v28 = vld [vmem:[#allocation6 + $0xa4] ss:$16 sps:$4 sm:$0xff]   ;;  %v1083_v40 = vld [vmem:[#allocation6 + $0xe8] ss:$16 sps:$4 sm:$0xff]   ;;  %v1077_v41 = vld [vmem:[#allocation6 + $0xa0] ss:$16 sps:$4 sm:$0xff]   ;;  %751 = vmatprep.subr.bf16.mxu1 %v1080_v39 }
 0x11e   : > { %709 = vmatpush1.bf16.msra.mxu0 %v1071_v37  ;;  %v1078_v42 = vld [vmem:[#allocation6 + $0x84] ss:$16 sps:$4 sm:$0xff]   ;;  %752 = vmatpush1.bf16.msra.mxu1 %v1083_v40  ;;  %v1086_v43 = vld [vmem:[#allocation6 + $0xcc] ss:$16 sps:$4 sm:$0xff]   ;;  %v1089_v44 = vld [vmem:[#allocation6 + $0xc8] ss:$16 sps:$4 sm:$0xff]  }
 0x11f   : > { %710 = vmatprep.subr.bf16.mxu0 %v1072_v38  ;;  %753 = vmatprep.subr.bf16.mxu1 %v1086_v43  ;;  %v1082_v45 = vld [vmem:[#allocation6 + $0x80] ss:$16 sps:$4 sm:$0xff]   ;;  %v1084_v46 = vld [vmem:[#allocation6 + $0x64] ss:$16 sps:$4 sm:$0xff]   ;;  %v1092_v47 = vld [vmem:[#allocation6 + $0xac] ss:$16 sps:$4 sm:$0xff]  }
 0x120   : > { %v1095_v48 = vld [vmem:[#allocation6 + $0xa8] ss:$16 sps:$4 sm:$0xff]   ;;  %v1098_v49 = vld [vmem:[#allocation6 + $0x8c] ss:$16 sps:$4 sm:$0xff]   ;;  %v1088_v50 = vld [vmem:[#allocation6 + $0x60] ss:$16 sps:$4 sm:$0xff]  }
 0x121   : > { %v1090_v51 = vld [vmem:[#allocation6 + $0x44] ss:$16 sps:$4 sm:$0xff]   ;;  %v1101_v52 = vld [vmem:[#allocation6 + $0x88] ss:$16 sps:$4 sm:$0xff]   ;;  %v1104_v53 = vld [vmem:[#allocation6 + $0x6c] ss:$16 sps:$4 sm:$0xff]  }
 0x122   : > { %711 = vmatpush1.bf16.msra.mxu0 %v1074_v27  ;;  %754 = vmatpush1.bf16.msra.mxu1 %v1089_v44  ;;  %v1094_v54 = vld [vmem:[#allocation6 + $0x40] ss:$16 sps:$4 sm:$0xff]   ;;  %v1096_v55 = vld [vmem:[#allocation6 + $0x24] ss:$16 sps:$4 sm:$0xff]   ;;  %v1107_v56 = vld [vmem:[#allocation6 + $0x68] ss:$16 sps:$4 sm:$0xff]  }
 0x123   : > { %712 = vmatprep.subr.bf16.mxu0 %v1075_v28  ;;  %755 = vmatprep.subr.bf16.mxu1 %v1092_v47  ;;  %v1109_v57 = vld [vmem:[#allocation6 + $0x4c] ss:$16 sps:$4 sm:$0xff]   ;;  %v1100_v58 = vld [vmem:[#allocation6 + $0x20] ss:$16 sps:$4 sm:$0xff]   ;;  %v1102_v59 = vld [vmem:[#allocation6 + $0x4] ss:$16 sps:$4 sm:$0xff]  }
 0x124   : > { %v1111_v60 = vld [vmem:[#allocation6 + $0x48] ss:$16 sps:$4 sm:$0xff]   ;;  %v1112_v61 = vld [vmem:[#allocation6 + $0x2c] ss:$16 sps:$4 sm:$0xff]   ;;  %v1106_v62 = vld [vmem:[#allocation6] ss:$16 sps:$4 sm:$0xff]  }
 0x125   : > { %v1114_v63 = vld [vmem:[#allocation6 + $0x28] ss:$16 sps:$4 sm:$0xff]   ;;  %v1115_v0 = vld [vmem:[#allocation6 + $0xc] ss:$16 sps:$4 sm:$0xff]   ;;  %s970_s2 = sshll.u32 %s1242_s0, 4  ;;  %v840_v44 = vld [vmem:[#allocation4 + $0x8] sm:$0xff] }
 0x126   : > { %713 = vmatpush1.bf16.msra.mxu0 %v1077_v41  ;;  %756 = vmatpush1.bf16.msra.mxu1 %v1095_v48  ;;  %v1117_v2 = vld [vmem:[#allocation6 + $0x8] ss:$16 sps:$4 sm:$0xff]   ;;  %s1440_s11 = sshra.s32 %s970_s2, 3  ;;  %s493_s0 = sadd.s32 1, %s1242_s0  }
 0x127   : > { %714 = vmatprep.subr.bf16.mxu0 %v1078_v42  ;;  %757 = vmatprep.subr.bf16.mxu1 %v1098_v49  ;;  %s1015_s12 = sshll.u32 %s1440_s11, 5  ;;  %s1014_s14 = sshll.u32 %s1440_s11, 2 }
 0x128   : > { %s1443_s13 = scalar_lea.vmem [#allocation2], %s1015_s12  ;;  %s867_s15 = scalar_lea.vmem [#allocation9], %s1014_s14 }
 0x129   : > { %v500_v3 = vld [vmem:[%s1443_s13] sm:$0xff]  ;;  %v501_v5 = vld [vmem:[%s1443_s13 + $0x8] sm:$0xff]  ;;  %v503_v21 = vld [vmem:[%s1443_s13 + $0x18] sm:$0xff]  ;;  %p490_p5 = scmp.ge.s32.totalorder %s493_s0, 8  }
 0x12a   : > { %715 = vmatpush1.bf16.msra.mxu0 %v1082_v45  ;;  %758 = vmatpush1.bf16.msra.mxu1 %v1101_v52  ;;  %v504_v8 = vld [vmem:[%s1443_s13 + $0x20] sm:$0xff]  ;;  %v505_v12 = vld [vmem:[%s1443_s13 + $0x28] sm:$0xff]  ;;  %v502_v23 = vld [vmem:[%s1443_s13 + $0x10] sm:$0xff]  ;;  %s1250_s16 = smov (%p490_p5), [#allocation10]  }
 0x12b   : > { %716 = vmatprep.subr.bf16.mxu0 %v1084_v46  ;;  %759 = vmatprep.subr.bf16.mxu1 %v1104_v53  ;;  %v507_v29 = vld [vmem:[%s1443_s13 + $0x38] sm:$0xff]  ;;  %v506_v36 = vld [vmem:[%s1443_s13 + $0x30] sm:$0xff]  ;;  %s898_s17 = sshll.u32 (%p490_p5), %s1250_s16, 4  ;;  %s899_s17 = int_to_ptr.vmem [resolvable:$true] %s898_s17 }
 0x12c   :  { %s1170_s18 = scalar_lea.vmem (%p490_p5), %s899_s17, 256  ;;  %p1175_p7 = scmp.lt.s32.totalorder (%p490_p5), %s899_s17, %s899_s17 }
 0x12d   :  { %p1171_p6 = scmp.ne.s32.totalorder (%p490_p5), %s899_s17, %s1170_s18  ;;  %p1176_p8 = scmp.lt.s32.totalorder (%p490_p5), %s1170_s18, %s1170_s18 }
 0x12e   : > { %717 = vmatpush1.bf16.msra.mxu0 %v1088_v50  ;;  %760 = vmatpush1.bf16.msra.mxu1 %v1107_v56 }
 0x12f   : > { %718 = vmatprep.subr.bf16.mxu0 %v1090_v51  ;;  %761 = vmatprep.subr.bf16.mxu1 %v1109_v57  ;;  %v841_v51 = vld [vmem:[#allocation4] sm:$0xff]  ;;  %p1177_p9 = por (%p490_p5), %p1176_p8, %p1175_p7 }
 0x131   :  { %p1178_p10 = pnand (%p490_p5), %p1177_p9, %p1171_p6 }
 0x132   : > { %719 = vmatpush1.bf16.msra.mxu0 %v1094_v54  ;;  %762 = vmatpush1.bf16.msra.mxu1 %v1111_v60 }
 0x133   : > { %720 = vmatprep.subr.bf16.mxu0 %v1096_v55  ;;  %763 = vmatprep.subr.bf16.mxu1 %v1112_v61 }
 0x136   : > { %721 = vmatpush1.bf16.msra.mxu0 %v1100_v58  ;;  %764 = vmatpush1.bf16.msra.mxu1 %v1114_v63 }
 0x137   : > { %722 = vmatprep.subr.bf16.mxu0 %v1102_v59  ;;  %765 = vmatprep.subr.bf16.mxu1 %v1115_v0 }
 0x13a   : > { %723 = vmatpush1.bf16.msra.mxu0 %v1106_v62  ;;  %766 = vmatpush1.bf16.msra.mxu1 %v1117_v2 }
 0x13d   : > { %741 = vmatmul.mubr.bf16.vlgmr.msra.gmra.mxu0 %v1108_v1  ;;  %784 = vmatmul.mubr.bf16.vlgmr.msra.gmra.mxu1 %v1108_v1 }
 0x1fd   : > { %v742_v4 = vpop.f32.mrf.mxu0  ;;  %v785_v15 = vpop.f32.mrf.mxu1 }
 0x1fe   : > { %v794_v6 = vadd.f32 %v742_v4, %v500_v3  ;;  %v796_v31 = vadd.f32 %v785_v15, %v502_v23 }
 0x1ff   : > { %v744_v7 = vpop.f32.mrf.mxu0  ;;  %v787_v19 = vpop.f32.mrf.mxu1 }
 0x200   : > { %v1006_v9 = vmul.f32 -1.442695, %v794_v6  ;;  %v795_v10 = vadd.f32 %v744_v7, %v501_v5  ;;  %v797_v24 = vadd.f32 %v787_v19, %v503_v21 }
 0x201   : > { %v746_v11 = vpop.f32.mrf.mxu0  ;;  %v789_v22 = vpop.f32.mrf.mxu1 }
 0x202   : > { %1118 = vpow2.f32 %v1006_v9  ;;  %v1008_v13 = vmul.f32 -1.442695, %v795_v10  ;;  %v798_v14 = vadd.f32 %v746_v11, %v504_v8  ;;  %v1010_v32 = vmul.f32 -1.442695, %v797_v24 }
 0x203   : > { %v748_v16 = vpop.f32.mrf.mxu0  ;;  %v791_v30 = vpop.f32.mrf.mxu1  ;;  %v800_v27 = vadd.f32 %v789_v22, %v506_v36 }
 0x204   : > { %1120 = vpow2.f32 %v1008_v13  ;;  %v1007_v17 = vmul.f32 -1.442695, %v798_v14  ;;  %v799_v18 = vadd.f32 %v748_v16, %v505_v12  ;;  %v801_v33 = vadd.f32 %v791_v30, %v507_v29 }
 0x206   : > { %1122 = vpow2.f32 %v1007_v17  ;;  %v1009_v20 = vmul.f32 -1.442695, %v799_v18  ;;  %v1011_v37 = vmul.f32 -1.442695, %v801_v33 }
 0x208   : > { %1124 = vpow2.f32 %v1009_v20 }
 0x209   : > { %1126 = vtanh.f32 %v796_v31 }
 0x20a   : > { %1128 = vpow2.f32 %v1010_v32 }
 0x20f   : > { %v1119_v34 = vpop.eup %1118 }
 0x210   : > { %v808_v35 = vadd.f32 1.0, %v1119_v34 }
 0x211   : > { %v1121_v25 = vpop.eup %1120 }
 0x212   : > { %1130 = vrcp.f32 %v808_v35  ;;  %v820_v26 = vadd.f32 1.0, %v1121_v25 }
 0x213   : > { %v1123_v38 = vpop.eup %1122 }
 0x214   : > { %1132 = vrcp.f32 %v820_v26  ;;  %v809_v28 = vadd.f32 1.0, %v1123_v38 }
 0x215   : > { %v1125_v39 = vpop.eup %1124  ;;  %1134 = vpow2.f32 %v1011_v37 }
 0x216   : > { %1136 = vrcp.f32 %v809_v28  ;;  %v821_v40 = vadd.f32 1.0, %v1125_v39  ;;  %v1127_v41 = vpop.eup %1126 }
 0x217   : > { %1138 = vtanh.f32 %v800_v27  ;;  %v1129_v42 = vpop.eup %1128 }
 0x218   : > { %1140 = vrcp.f32 %v821_v40  ;;  %v834_v46 = vadd.f32 1.0, %v1129_v42 }
 0x21a   : > { %1142 = vrcp.f32 %v834_v46 }
 0x21f   : > { %v1131_v43 = vpop.eup %1130 }
 0x220   : > { %v844_v49 = vmul.f32 %v1131_v43, %v1127_v41 }
 0x221   : > { %v1133_v45 = vpop.eup %1132 }
 0x222   : > { %v1135_v47 = vpop.eup %1134  ;;  %v842_v48 = vmul.f32 %v1133_v45, %v840_v44 }
 0x223   : > { %v1137_v50 = vpop.eup %1136  ;;  %v835_v55 = vadd.f32 1.0, %v1135_v47 }
 0x224   : > { %v1139_v52 = vpop.eup %1138  ;;  %v846_v53 = vadd.f32 %v844_v49, %v842_v48 }
 0x225   : > { %v1141_v54 = vpop.eup %1140  ;;  %v845_v57 = vmul.f32 %v1139_v52, %v1137_v50 }
 0x226   : > { %1144 = vtanh.f32 %v846_v53  ;;  %852 = vst [vmem:[#allocation4 + $0x8] sm:$0xff] %v846_v53  ;;  %v843_v56 = vmul.f32 %v1141_v54, %v841_v51 }
 0x227   : > { %1146 = vrcp.f32 %v835_v55  ;;  %v1143_v59 = vpop.eup %1142 }
 0x228   : > { %v847_v58 = vadd.f32 %v845_v57, %v843_v56 }
 0x22a   : > { %1148 = vtanh.f32 %v847_v58  ;;  %853 = vst [vmem:[#allocation4] sm:$0xff] %v847_v58 }
 0x22d   :  { %v877_v4 = vld [vmem:[#allocation4 + $0x8] sm:$0xff] (%p490_p5) }
 0x22e   :  { %879 = vst [vmem:[#allocation12] sm:$0xff] (%p490_p5), %v877_v4 }
 0x231   :  { %v878_v5 = vld [vmem:[#allocation4] sm:$0xff] (%p490_p5) }
 0x232   :  { %880 = vst [vmem:[#allocation12 + $0x8] sm:$0xff] (%p490_p5), %v878_v5 }
 0x233   : > { %v1145_v60 = vpop.eup %1144 }
 0x234   : > { %v850_v61 = vmul.f32 %v1145_v60, %v1143_v59  ;;  %v1147_v62 = vpop.eup %1146 }
 0x236   : > { %854 = vst [vmem:[#allocation3] sm:$0xff] %v850_v61 }
 0x237   : > { %v1149_v63 = vpop.eup %1148 }
 0x238   : > { %v851_v0 = vmul.f32 %v1149_v63, %v1147_v62  ;;  %492 = sbr.rel (!%p490_p5) target bundleno = 283 (0x11b), region = 73 }
 0x23a   : > { %855 = vst [vmem:[#allocation3 + $0x8] sm:$0xff] %v851_v0  ;;  %v1021_v1 = vpack.c.bf16 %v851_v0, %v850_v61 }
 0x23c   : > { %1022 = vst [vmem:[#allocation5] sm:$0xff] %v1021_v1   ;;  %1027 = vst [vmem:[%s867_s15] sm:$0xff] %v1021_v1  }
 0x23d   :  { %v873_v2 = vld [vmem:[#allocation3] sm:$0xff] }
 0x23e   :  { %875 = vst [vmem:[#allocation10] sm:$0xff] %v873_v2 }
 0x241   :  { %v874_v3 = vld [vmem:[#allocation3 + $0x8] sm:$0xff] }
 0x242   :  { %876 = vst [vmem:[#allocation10 + $0x8] sm:$0xff] %v874_v3 }
 0x243   :  { %1181 = shalt.err (!%p1178_p10)
}
 0x244   :  { %s1251_s19 = smov 128   ;;  %s1252_s20 = smov 8  }
 0x245   :  { %904 = dma.vmem_to_hbm [thread:$0]  %s899_s17, 256, %s1471_s5, [#allocation11], %s1251_s19, %s1251_s19, %s1252_s20  }
 0x246   :  { %s1253_s1 = smov [#allocation9]  }
 0x247   :  { %s886_s23 = sshll.u32 %s1253_s1, 4  ;;  %s887_s23 = int_to_ptr.vmem [resolvable:$true] %s886_s23 }
 0x248   :  { %s1190_s24 = scalar_lea.vmem %s887_s23, 1024  ;;  %p1195_p12 = scmp.lt.s32.totalorder %s887_s23, %s887_s23 }
 0x249   :  { %p1191_p11 = scmp.ne.s32.totalorder %s887_s23, %s1190_s24  ;;  %p1196_p13 = scmp.lt.s32.totalorder %s1190_s24, %s1190_s24 }
 0x24b   :  { %p1197_p0 = por %p1196_p13, %p1195_p12 }
 0x24d   :  { %p1198_p1 = pnand %p1197_p0, %p1191_p11 }
 0x24f   :  { %1201 = shalt.err (!%p1198_p1)
}
 0x250   :  { %s1254_s25 = smov 64   ;;  %s1255_s26 = smov 4  }
 0x251   :  { %892 = dma.vmem_to_hbm [thread:$0]  %s887_s23, 1024, %s1470_s4, [#allocation8], %s1254_s25, %s1254_s25, %s1255_s26  }
 0x252   :  { %s1256_s29 = smov [#allocation12]  }
 0x253   :  { %s910_s30 = sshll.u32 %s1256_s29, 4  ;;  %s911_s30 = int_to_ptr.vmem [resolvable:$true] %s910_s30 }
 0x254   :  { %s1210_s5 = scalar_lea.vmem %s911_s30, 256  ;;  %p1215_p3 = scmp.lt.s32.totalorder %s911_s30, %s911_s30 }
 0x255   :  { %p1211_p2 = scmp.ne.s32.totalorder %s911_s30, %s1210_s5  ;;  %p1216_p4 = scmp.lt.s32.totalorder %s1210_s5, %s1210_s5 }
 0x257   :  { %p1217_p5 = por %p1216_p4, %p1215_p3 }
 0x259   :  { %p1218_p6 = pnand %p1217_p5, %p1211_p2 }
 0x25b   :  { %1221 = shalt.err (!%p1218_p6)
}
 0x25c   :  { %916 = dma.vmem_to_hbm [thread:$0]  %s911_s30, 256, %s1472_s6, [#allocation11], %s1251_s19, %s1251_s19, %s1252_s20  }
 0x25d   :  { %1236 = dma.done.wait [#allocation8], 1024  }
 0x25e   :  { %1237 = vsyncadd [#allocation8], 4294966272 }
 0x25f   :  { %1238 = dma.done.wait [#allocation11], 512  }
 0x260   :  { %1239 = vsyncadd [#allocation11], 4294966784 }
 0x261   :  { %926 = vsyncpa [#allocation7], 1 }
 0x262   :  { %927 = vsyncpa [#allocation8], 1 }
 0x263   :  { %928 = vsyncpa [#allocation11], 1 }

</bundles_post_ra>
